<compile_context>
chip_gen: v5e
topology: v5e:2x2
jax: 0.10.0
libtpu: 0.0.40
codegen_flags: <defaults>
</compile_context>

<pallas_src>
import functools

import jax
import jax.numpy as jnp
from jax.experimental import pallas as pl
from jax.experimental.pallas import tpu as pltpu


def _round_up(x, m):
    return ((x + m - 1) // m) * m


def _patch_embed_kernel(x_ref, w_ref, b_ref, o_ref):
    # x_ref: (tm, Kp) compute dtype, w_ref: (Kp, Np) compute dtype,
    # b_ref: (1, Np) f32, o_ref: (tm, Np) f32.
    acc = jnp.dot(x_ref[...], w_ref[...], preferred_element_type=jnp.float32)
    o_ref[...] = (acc + b_ref[...]).astype(o_ref.dtype)


def patch_embed_matmul(patches, weight, bias, *, compute_dtype=jnp.bfloat16,
                       tm=256):
    """patches: (M, K), weight: (K, N), bias: (N,) -> (M, N) f32.

    Tiles M over a pipelined 1-D grid (weight/bias VMEM-resident across the
    grid), pads K/N to multiples of 128 for lane-dense stores and a full MXU
    contraction, and runs the projection in `compute_dtype` (bf16) with f32
    accumulation.
    """
    M, K = patches.shape
    K2, N = weight.shape
    assert K == K2

    Kp = _round_up(max(K, 128), 128)
    Np = _round_up(max(N, 128), 128)
    tm = min(tm, _round_up(M, 8))
    Mp = _round_up(M, tm)

    itemsize = jnp.dtype(compute_dtype).itemsize
    x_p = jnp.zeros((Mp, Kp), compute_dtype).at[:M, :K].set(
        patches.astype(compute_dtype))
    w_p = jnp.zeros((Kp, Np), compute_dtype).at[:K, :N].set(
        weight.astype(compute_dtype))
    b_p = jnp.zeros((1, Np), jnp.float32).at[0, :N].set(
        bias.astype(jnp.float32))

    cost = pl.CostEstimate(
        flops=2 * Mp * Kp * Np,
        transcendentals=0,
        bytes_accessed=(Mp * Kp + Kp * Np) * itemsize + Np * 4 + Mp * Np * 4,
    )

    out = pl.pallas_call(
        _patch_embed_kernel,
        out_shape=jax.ShapeDtypeStruct((Mp, Np), jnp.float32),
        grid_spec=pltpu.PrefetchScalarGridSpec(
            num_scalar_prefetch=0,
            grid=(Mp // tm,),
            in_specs=[
                pl.BlockSpec((tm, Kp), lambda i: (i, 0)),   # patches tile
                pl.BlockSpec((Kp, Np), lambda i: (0, 0)),   # weight (resident)
                pl.BlockSpec((1, Np), lambda i: (0, 0)),    # bias (resident)
            ],
            out_specs=pl.BlockSpec((tm, Np), lambda i: (i, 0)),
        ),
        compiler_params=pltpu.CompilerParams(
            dimension_semantics=("parallel",)),
        cost_estimate=cost,
    )(x_p, w_p, b_p)
    return out[:M, :N]


def _patch_embed_forward(x, weight, bias, *, ph, pw, grid_h, grid_w,
                         embed_dim, compute_dtype, tm):
    B, C, H, W = x.shape
    # Extract non-overlapping patches. With NCHW input the patch-identity axes
    # (B, gh, gw) are interleaved in memory with the content axes (C, ph, pw),
    # so one transpose of x is unavoidable for the matmul formulation; under
    # jit it fuses with the cast/pad glue feeding the pallas_call.
    xp = x.reshape(B, C, grid_h, ph, grid_w, pw)
    xp = jnp.transpose(xp, (0, 2, 4, 1, 3, 5))        # (B, gh, gw, C, ph, pw)
    patches = xp.reshape(B * grid_h * grid_w, C * ph * pw)
    # Conv2d weight (E, C, ph, pw) -> (C*ph*pw, E): matches patch element order.
    w2d = weight.reshape(embed_dim, C * ph * pw).T
    out = patch_embed_matmul(patches, w2d, bias,
                             compute_dtype=compute_dtype, tm=tm)
    return out.reshape(B, grid_h * grid_w, embed_dim)


class PatchEmbedPallas:
    """JAX/Pallas port of PatchEmbed (flatten=True, norm_layer=None)."""

    def __init__(self, img_size=16, patch_size=4, in_chans=4, embed_dim=32,
                 compute_dtype=jnp.bfloat16, tm=256,
                 key=jax.random.PRNGKey(0)):
        img_size = img_size if isinstance(img_size, tuple) else (img_size, img_size)
        patch_size = (patch_size, patch_size)
        self.img_size = img_size
        self.patch_size = patch_size
        self.grid_size = (img_size[0] // patch_size[0], img_size[1] // patch_size[1])
        self.num_patches = self.grid_size[0] * self.grid_size[1]
        self.in_chans = in_chans
        self.embed_dim = embed_dim
        self.compute_dtype = compute_dtype

        kw, kb = jax.random.split(key)
        # Conv2d weight: (embed_dim, in_chans, ph, pw); deterministic init.
        fan_in = in_chans * patch_size[0] * patch_size[1]
        self.proj_weight = (jax.random.normal(
            kw, (embed_dim, in_chans, patch_size[0], patch_size[1]),
            dtype=jnp.float32) * (1.0 / fan_in ** 0.5))
        self.proj_bias = (jax.random.normal(
            kb, (embed_dim,), dtype=jnp.float32) * 0.01)
        # norm_layer=None -> Identity (no-op).

        self._forward = jax.jit(functools.partial(
            _patch_embed_forward,
            ph=patch_size[0], pw=patch_size[1],
            grid_h=self.grid_size[0], grid_w=self.grid_size[1],
            embed_dim=embed_dim, compute_dtype=compute_dtype, tm=tm))

    def __call__(self, x):
        B, C, H, W = x.shape
        assert H == self.img_size[0] and W == self.img_size[1], (
            f"Input image size ({H}*{W}) doesn't match model "
            f"({self.img_size[0]}*{self.img_size[1]}).")
        return self._forward(x, self.proj_weight, self.proj_bias)


def _reference(x, weight, bias, patch_size, compute_dtype=jnp.bfloat16):
    # Pure-JAX reference via lax.conv (NCHW / OIHW), with x/weight quantized to
    # the kernel's compute dtype so the comparison isolates accumulation order.
    xq = x.astype(compute_dtype).astype(jnp.float32)
    wq = weight.astype(compute_dtype).astype(jnp.float32)
    out = jax.lax.conv_general_dilated(
        xq, wq, window_strides=patch_size, padding="VALID",
        dimension_numbers=("NCHW", "OIHW", "NCHW"))
    out = out + bias.reshape(1, -1, 1, 1)
    B, E, GH, GW = out.shape
    return jnp.transpose(out.reshape(B, E, GH * GW), (0, 2, 1))


if __name__ == "__main__":
    key = jax.random.PRNGKey(0)
    kx, kparams = jax.random.split(key)

    B, C, H, W = 2, 4, 16, 16
    patch = 4
    embed_dim = 32

    x = jax.random.normal(kx, (B, C, H, W), dtype=jnp.float32)

    model = PatchEmbedPallas(img_size=H, patch_size=patch, in_chans=C,
                             embed_dim=embed_dim, key=kparams)
    out = model(x)
    out = jax.block_until_ready(out)

    ref = _reference(x, model.proj_weight, model.proj_bias, (patch, patch),
                     compute_dtype=model.compute_dtype)
    assert out.shape == (B, model.num_patches, embed_dim), out.shape
    assert jnp.allclose(out, ref, atol=2e-3, rtol=2e-3), float(
        jnp.max(jnp.abs(out - ref)))

    print("KERNEL_OK")
</pallas_src>

<mosaic_0001>
module attributes {stable_mosaic.version = 11 : i64} {
  func.func @_patch_embed_kernel(%arg0: i32, %arg1: memref<32x128xbf16, #tpu.memory_space<vmem>>, %arg2: memref<128x128xbf16, #tpu.memory_space<vmem>>, %arg3: memref<1x128xf32, #tpu.memory_space<vmem>>, %arg4: memref<32x128xf32, #tpu.memory_space<vmem>>) attributes {dimension_semantics = [#tpu.dimension_semantics<parallel>], iteration_bounds = array<i64: 1>, scalar_prefetch = 0 : i64, scratch_operands = 0 : i64, tpu.core_type = #tpu.core_type<tc>, window_params = [{transform_indices = @transform_0, window_bounds = array<i64: 32, 128>}, {pipeline_mode = #tpu.pipeline_mode<synchronous>, transform_indices = @transform_1, window_bounds = array<i64: 128, 128>}, {pipeline_mode = #tpu.pipeline_mode<synchronous>, transform_indices = @transform_2, window_bounds = array<i64: 1, 128>}, {transform_indices = @transform_3, window_bounds = array<i64: 32, 128>}]} {
    %c0 = arith.constant 0 : index
    %c0_0 = arith.constant 0 : index
    %0 = vector.load %arg1[%c0, %c0_0] : memref<32x128xbf16, #tpu.memory_space<vmem>>, vector<32x128xbf16>
    %c0_1 = arith.constant 0 : index
    %c0_2 = arith.constant 0 : index
    %1 = vector.load %arg2[%c0_1, %c0_2] : memref<128x128xbf16, #tpu.memory_space<vmem>>, vector<128x128xbf16>
    %cst = arith.constant dense<0.000000e+00> : vector<32x128xf32>
    %2 = tpu.matmul %0, %1, %cst {dimension_numbers = #tpu.dot_dimension_numbers<[1], [0], [0], [1], [0, 0, 1, 1], [], []>} : vector<32x128xbf16>, vector<128x128xbf16>, vector<32x128xf32> -> vector<32x128xf32>
    %c0_3 = arith.constant 0 : index
    %c0_4 = arith.constant 0 : index
    %3 = vector.load %arg3[%c0_3, %c0_4] : memref<1x128xf32, #tpu.memory_space<vmem>>, vector<1x128xf32>
    %4 = vector.broadcast %3 : vector<1x128xf32> to vector<32x128xf32>
    %5 = arith.addf %2, %4 : vector<32x128xf32>
    %c0_5 = arith.constant 0 : index
    %c0_6 = arith.constant 0 : index
    %6 = vector.load %arg4[%c0_5, %c0_6] : memref<32x128xf32, #tpu.memory_space<vmem>>, vector<32x128xf32>
    tpu.vector_store %arg4[%c0_5, %c0_6], %5 {strides = array<i32>} : memref<32x128xf32, #tpu.memory_space<vmem>>, vector<32x128xf32>,
    return
  }
  func.func @transform_0(%arg0: i32) -> (i32, i32) {
    %c0_i32 = arith.constant 0 : i32
    %c0_i32_0 = arith.constant 0 : i32
    return %arg0, %c0_i32 : i32, i32
  }
  func.func @transform_1(%arg0: i32) -> (i32, i32) {
    %c0_i32 = arith.constant 0 : i32
    %c0_i32_0 = arith.constant 0 : i32
    %c0_i32_1 = arith.constant 0 : i32
    return %c0_i32, %c0_i32_0 : i32, i32
  }
  func.func @transform_2(%arg0: i32) -> (i32, i32) {
    %c0_i32 = arith.constant 0 : i32
    %c0_i32_0 = arith.constant 0 : i32
    %c0_i32_1 = arith.constant 0 : i32
    return %c0_i32, %c0_i32_0 : i32, i32
  }
  func.func @transform_3(%arg0: i32) -> (i32, i32) {
    %c0_i32 = arith.constant 0 : i32
    %c0_i32_0 = arith.constant 0 : i32
    return %arg0, %c0_i32 : i32, i32
  }
}

</mosaic_0001>

<bundles_post_ra>
// kernel: _patch_embed_forward.1
= control target key start
LH: loop header
LB: loop body
LE: loop exit
PB: predicated region body
PF: predicated region fallthrough
CT: control target
= control target key end

     0   :  { %s287_s0 = inlined_call_operand.vmem [shape: bf16[32,128], index: 0, kind: input, shape index: {}]   ;;  %s288_s1 = inlined_call_operand.vmem [shape: bf16[128,128], index: 1, kind: input, shape index: {}]   ;;  %s289_s2 = inlined_call_operand.vmem [shape: f32[1,128], index: 2, kind: input, shape index: {}]   ;;  %s290_s3 = inlined_call_operand.hbm [shape: f32[32,128], index: 3, kind: output, shape index: {}]  }
   0x1   :  { %v189_v0 = vld [vmem:[%s288_s1 + $0x38] sm:$0xff]  ;;  %v188_v1 = vld [vmem:[%s288_s1 + $0x30] sm:$0xff] }
   0x2   :  { %99 = vmatpush.bf16.msra.mxu0 %v189_v0  ;;  %190 = vmatpush.bf16.msra.mxu1 %v189_v0 }
   0x3   :  { %8 = vsyncpa [#allocation3], 0  ;;  %v187_v2 = vld [vmem:[%s288_s1 + $0x28] sm:$0xff]  ;;  %v186_v3 = vld [vmem:[%s288_s1 + $0x20] sm:$0xff]  ;;  %s230_s10 = smov 8  }
   0x4   :  { %v185_v4 = vld [vmem:[%s288_s1 + $0x18] sm:$0xff]  ;;  %v184_v5 = vld [vmem:[%s288_s1 + $0x10] sm:$0xff]  ;;  %v183_v6 = vld [vmem:[%s288_s1 + $0x8] sm:$0xff] }
   0x5   :  { %v182_v7 = vld [vmem:[%s288_s1] sm:$0xff]  ;;  %v181_v9 = vld [vmem:[%s287_s0 + $0x8] sm:$0xff]  ;;  %s228_s1 = smov [#allocation2]  }
   0x6   :  { %100 = vmatpush.bf16.msra.mxu0 %v188_v1  ;;  %191 = vmatpush.bf16.msra.mxu1 %v188_v1  ;;  %v180_v8 = vld [vmem:[%s287_s0] sm:$0xff]  ;;  %s126_s7 = sshll.u32 %s228_s1, 4  ;;  %s128_s0 = sshll.u32 %s290_s3, 4  ;;  %s127_s7 = int_to_ptr.vmem [resolvable:$true] %s126_s7  ;;  %s129_s0 = int_to_ptr.hbm [resolvable:$true] %s128_s0 }
   0x7   :  { %v201_v10 = vld [vmem:[%s289_s2] ss:$0 sm:$0xff]  ;;  %s229_s2 = smov 128  }
   0xa   :  { %101 = vmatpush.bf16.msra.mxu0 %v187_v2  ;;  %192 = vmatpush.bf16.msra.mxu1 %v187_v2 }
   0xe   :  { %102 = vmatpush.bf16.msra.mxu0 %v186_v3  ;;  %193 = vmatpush.bf16.msra.mxu1 %v186_v3 }
  0x12   :  { %103 = vmatpush.bf16.msra.mxu0 %v185_v4  ;;  %194 = vmatpush.bf16.msra.mxu1 %v185_v4 }
  0x16   :  { %104 = vmatpush.bf16.msra.mxu0 %v184_v5  ;;  %195 = vmatpush.bf16.msra.mxu1 %v184_v5 }
  0x1a   :  { %105 = vmatpush.bf16.msra.mxu0 %v183_v6  ;;  %196 = vmatpush.bf16.msra.mxu1 %v183_v6 }
  0x1e   :  { %106 = vmatpush.bf16.msra.mxu0 %v182_v7  ;;  %197 = vmatpush.bf16.msra.mxu1 %v182_v7 }
  0x21   :  { %107 = vmatmul.bf16.vlgmr.msra.gmra.mxu0 %v180_v8  ;;  %112 = vmatmul.bf16.vlgmr.msra.gmra.mxu1 %v181_v9 }
  0x9e   :  { %v108_v11 = vpop.f32.mrf.mxu0  ;;  %v113_v12 = vpop.f32.mrf.mxu1 }
  0x9f   :  { %v109_v13 = vadd.f32 %v201_v10, %v108_v11  ;;  %v114_v14 = vadd.f32 %v201_v10, %v113_v12 }
  0xa1   :  { %118 = vst [vmem:[#allocation2] sm:$0xff] %v109_v13 }
  0xa2   :  { %120 = vst [vmem:[#allocation2 + $0x10] sm:$0xff] %v114_v14 }
  0xa6   :  { %v110_v15 = vpop.f32.mrf.mxu0  ;;  %v115_v16 = vpop.f32.mrf.mxu1 }
  0xa7   :  { %v111_v17 = vadd.f32 %v201_v10, %v110_v15  ;;  %v116_v18 = vadd.f32 %v201_v10, %v115_v16 }
  0xa9   :  { %119 = vst [vmem:[#allocation2 + $0x8] sm:$0xff] %v111_v17 }
  0xaa   :  { %121 = vst [vmem:[#allocation2 + $0x18] sm:$0xff] %v116_v18 }
  0xab   :  { %134 = dma.vmem_to_hbm [thread:$0]  %s127_s7, 512, %s129_s0, [#allocation3], %s229_s2, %s229_s2, %s230_s10  }
  0xac   :  { %226 = dma.done.wait [#allocation3], 512  }
  0xad   :  { %227 = vsyncadd [#allocation3], 4294966784 }
  0xae   :  { %139 = vsyncpa [#allocation3], 1 }

</bundles_post_ra>
